<compile_context>
chip_gen: v7x
topology: tpu7x:2x2x1
jax: 0.10.0
libtpu: 0.0.40
codegen_flags: <defaults>
</compile_context>

<pallas_src>
import math

import jax
import jax.numpy as jnp
from jax import lax
from jax.experimental import pallas as pl
from jax.experimental.pallas import tpu as pltpu

_INV_SQRT2 = 1.0 / math.sqrt(2.0)
_LN_EPS = 1e-12


def _round_up(x, m):
    return (x + m - 1) // m * m


def _chip_config():
    """Per-TPU-generation tile caps / VMEM limits (conservative fallback)."""
    kind = ""
    try:
        kind = jax.devices()[0].device_kind.lower()
    except Exception:
        pass
    if "v6" in kind:   # v6e: 1 TC, 128 MiB VMEM, roofline crossover ~650 flops/B
        return dict(tm_cap=2048, tv_cap=2048, vmem=96 * 1024 * 1024, row_split=False)
    if "7" in kind:    # v7x: 2 TCs, 64 MiB VMEM per TC
        return dict(tm_cap=1024, tv_cap=1024, vmem=56 * 1024 * 1024, row_split=True)
    if "v5" in kind:   # v5e/v5p: low roofline, 128 MiB VMEM, 1 TC -> no row split
        return dict(tm_cap=512, tv_cap=2048, vmem=96 * 1024 * 1024, row_split=False)
    return dict(tm_cap=512, tv_cap=1024, vmem=48 * 1024 * 1024, row_split=False)


# ---------------------------------------------------------------- kernels ----

def _transform_kernel(x_ref, wd_ref, bd_ref, gamma_ref, beta_ref, t_ref):
    """dense -> gelu(erf) -> LayerNorm, written in t_ref's (bf16) dtype."""
    h = jnp.dot(x_ref[...], wd_ref[...],
                preferred_element_type=jnp.float32) + bd_ref[...]
    h = h * 0.5 * (1.0 + lax.erf(h * jnp.float32(_INV_SQRT2)))
    mu = jnp.mean(h, axis=-1, keepdims=True)
    var = jnp.mean((h - mu) ** 2, axis=-1, keepdims=True)
    h = (h - mu) * lax.rsqrt(var + jnp.float32(_LN_EPS))
    t_ref[...] = (gamma_ref[...] * h + beta_ref[...]).astype(t_ref.dtype)


def _decoder_kernel(t_ref, wdec_ref, bdec_ref, out_ref):
    """decoder projection tile + bias (f32 MXU accumulation)."""
    out_ref[...] = (jnp.dot(t_ref[...], wdec_ref[...],
                            preferred_element_type=jnp.float32)
                    + bdec_ref[...]).astype(out_ref.dtype)


def _fused_kernel(x_ref, wd_ref, bd_ref, gamma_ref, beta_ref,
                  wdec_ref, bdec_ref, out_ref, t_ref):
    # NOTE: the t_ref scratch reuse is only correct because the vocab axis is
    # the innermost grid axis and is marked "arbitrary" (sequential).
    @pl.when(pl.program_id(1) == 0)
    def _():
        _transform_kernel(x_ref, wd_ref, bd_ref, gamma_ref, beta_ref, t_ref)

    _decoder_kernel(t_ref, wdec_ref, bdec_ref, out_ref)


# --------------------------------------------------------- parameter prep ----

def prepare_lm_head_params(raw, *, tv=None, weight_dtype=jnp.bfloat16):
    """One-time parameter preparation. Run OUTSIDE the jitted forward.

    raw dict (PyTorch layout):
      dense_w (H, H) applied as x @ dense_w, dense_b (H,),
      ln_gamma (H,), ln_beta (H,),
      decoder_w (V, H)  -- tied embedding weights,
      decoder_b (V,).
    """
    cfg = _chip_config()
    wdec_t = jnp.asarray(raw["decoder_w"]).T               # (H, V)
    H, V = wdec_t.shape
    if tv is None:
        tv = min(cfg["tv_cap"], _round_up(V, 256))          # lane/MXU-dense tile
    V_pad = _round_up(V, tv)
    bdec = jnp.asarray(raw["decoder_b"], jnp.float32).reshape(1, V)
    if V_pad != V:
        wdec_t = jnp.pad(wdec_t, ((0, 0), (0, V_pad - V)))
        bdec = jnp.pad(bdec, ((0, 0), (0, V_pad - V)))
    # TODO(synk): optional fp8 decoder-weight variant for v7x (needs accuracy eval).
    return {
        "dense_w": jnp.asarray(raw["dense_w"], weight_dtype),          # (H, H) bf16
        "dense_b": jnp.asarray(raw["dense_b"], jnp.float32).reshape(1, H),
        "ln_gamma": jnp.asarray(raw["ln_gamma"], jnp.float32).reshape(1, H),
        "ln_beta": jnp.asarray(raw["ln_beta"], jnp.float32).reshape(1, H),
        "decoder_w_t": wdec_t.astype(weight_dtype),                    # (H, V_pad) bf16
        "decoder_b": bdec,                                             # (1, V_pad) f32
        "vocab_size": V,
        "tv": tv,
    }


# ------------------------------------------------------------------ forward --

def bert_lm_prediction_head(hidden_states, params, *, tm=None,
                            out_dtype=jnp.bfloat16, two_pass=None):
    """hidden_states: (B, S, H). params: output of prepare_lm_head_params.
    Returns (B, S, V) logits (default bf16)."""
    B, S, H = hidden_states.shape
    N = B * S
    cfg = _chip_config()

    wd, bd = params["dense_w"], params["dense_b"]
    gamma, beta = params["ln_gamma"], params["ln_beta"]
    wdec_t, bdec = params["decoder_w_t"], params["decoder_b"]
    V, tv = params["vocab_size"], params["tv"]
    V_pad = wdec_t.shape[1]

    # activations streamed in the weight dtype (bf16); f32 accumulation in-kernel
    x = hidden_states.reshape(N, H).astype(wd.dtype)

    if tm is None:
        if cfg["row_split"] and N >= 32:
            # v7x fused path: 2-way row split so both TensorCores get work
            tm = min(cfg["tm_cap"], max(16, _round_up(pl.cdiv(N, 2), 16)))
        else:
            tm = min(cfg["tm_cap"], max(16, _round_up(N, 16)))
    N_pad = _round_up(N, tm)
    if N_pad != N:                       # cheap: only the activations are padded
        x = jnp.pad(x, ((0, N_pad - N), (0, 0)))

    n_row = N_pad // tm
    n_voc = V_pad // tv
    if two_pass is None:
        # many row blocks -> fused kernel would re-stream the (H, V) weight n_row
        # times; switch to the two-pass structure that keeps weight tiles resident.
        two_pass = n_row >= 4

    compiler = pltpu.CompilerParams(
        dimension_semantics=("parallel", "arbitrary"),
        vmem_limit_bytes=cfg["vmem"])

    if not two_pass:
        # ---- fused path (small N): transform once per row tile into VMEM scratch
        out = pl.pallas_call(
            _fused_kernel,
            out_shape=jax.ShapeDtypeStruct((N_pad, V_pad), out_dtype),
            grid_spec=pltpu.PrefetchScalarGridSpec(
                num_scalar_prefetch=0,
                grid=(n_row, n_voc),
                in_specs=[
                    pl.BlockSpec((tm, H), lambda i, j: (i, 0)),   # x rows
                    pl.BlockSpec((H, H), lambda i, j: (0, 0)),    # dense W (resident)
                    pl.BlockSpec((1, H), lambda i, j: (0, 0)),    # dense b
                    pl.BlockSpec((1, H), lambda i, j: (0, 0)),    # LN gamma
                    pl.BlockSpec((1, H), lambda i, j: (0, 0)),    # LN beta
                    pl.BlockSpec((H, tv), lambda i, j: (0, j)),   # decoder W^T tile
                    pl.BlockSpec((1, tv), lambda i, j: (0, j)),   # decoder bias tile
                ],
                out_specs=pl.BlockSpec((tm, tv), lambda i, j: (i, j)),
                scratch_shapes=[pltpu.VMEM((tm, H), wdec_t.dtype)],
            ),
            compiler_params=compiler,
        )(x, wd, bd, gamma, beta, wdec_t, bdec)
        return out[:N, :V].reshape(B, S, V)

    # ---- two-pass path (large N) -------------------------------------------
    # Pass A: transform -> T = (N_pad, H) bf16 in HBM.
    t = pl.pallas_call(
        _transform_kernel,
        out_shape=jax.ShapeDtypeStruct((N_pad, H), wdec_t.dtype),
        grid_spec=pltpu.PrefetchScalarGridSpec(
            num_scalar_prefetch=0,
            grid=(n_row,),
            in_specs=[
                pl.BlockSpec((tm, H), lambda i: (i, 0)),
                pl.BlockSpec((H, H), lambda i: (0, 0)),
                pl.BlockSpec((1, H), lambda i: (0, 0)),
                pl.BlockSpec((1, H), lambda i: (0, 0)),
                pl.BlockSpec((1, H), lambda i: (0, 0)),
            ],
            out_specs=pl.BlockSpec((tm, H), lambda i: (i, 0)),
        ),
        compiler_params=pltpu.CompilerParams(
            dimension_semantics=("parallel",),
            vmem_limit_bytes=cfg["vmem"]),
    )(x, wd, bd, gamma, beta)

    # Pass B: decoder matmul. Vocab axis is OUTER so the (H, tv) weight tile's
    # block index is unchanged across the inner row steps -> it stays resident
    # in VMEM (no re-DMA); only the small T row tiles stream.
    out = pl.pallas_call(
        _decoder_kernel,
        out_shape=jax.ShapeDtypeStruct((N_pad, V_pad), out_dtype),
        grid_spec=pltpu.PrefetchScalarGridSpec(
            num_scalar_prefetch=0,
            grid=(n_voc, n_row),
            in_specs=[
                pl.BlockSpec((tm, H), lambda j, i: (i, 0)),   # T row tile
                pl.BlockSpec((H, tv), lambda j, i: (0, j)),   # resident weight tile
                pl.BlockSpec((1, tv), lambda j, i: (0, j)),   # decoder bias tile
            ],
            out_specs=pl.BlockSpec((tm, tv), lambda j, i: (i, j)),
        ),
        compiler_params=compiler,
    )(t, wdec_t, bdec)
    return out[:N, :V].reshape(B, S, V)


# ---------------------------------------------------------------- reference --

def _reference(hidden_states, params):
    """Pure-JAX reference mirroring the kernel's bf16 weight/activation path."""
    B, S, H = hidden_states.shape
    wd = params["dense_w"]
    x = hidden_states.reshape(-1, H).astype(wd.dtype)
    h = jnp.dot(x, wd, preferred_element_type=jnp.float32) + params["dense_b"]
    h = h * 0.5 * (1.0 + lax.erf(h * jnp.float32(_INV_SQRT2)))
    mu = jnp.mean(h, axis=-1, keepdims=True)
    var = jnp.mean((h - mu) ** 2, axis=-1, keepdims=True)
    h = (h - mu) * lax.rsqrt(var + jnp.float32(_LN_EPS))
    h = params["ln_gamma"] * h + params["ln_beta"]
    wdec = params["decoder_w_t"]
    t = h.astype(wdec.dtype)
    logits = jnp.dot(t, wdec, preferred_element_type=jnp.float32) + params["decoder_b"]
    V = params["vocab_size"]
    return logits[:, :V].reshape(B, S, V)


if __name__ == "__main__":
    B, S, H, V = 2, 8, 32, 256
    key = jax.random.PRNGKey(0)
    k_x, k_wd, k_bd, k_emb, k_g, k_b = jax.random.split(key, 6)

    hidden_states = jax.random.normal(k_x, (B, S, H), dtype=jnp.float32)

    # Deterministic synthetic parameters (shapes per module __init__).
    embedding_weights = jax.random.normal(k_emb, (V, H), dtype=jnp.float32) * 0.02
    raw_params = {
        "dense_w": jax.random.normal(k_wd, (H, H), dtype=jnp.float32) * 0.02,
        "dense_b": jax.random.normal(k_bd, (H,), dtype=jnp.float32) * 0.02,
        "ln_gamma": 1.0 + 0.1 * jax.random.normal(k_g, (H,), dtype=jnp.float32),
        "ln_beta": 0.1 * jax.random.normal(k_b, (H,), dtype=jnp.float32),
        "decoder_w": embedding_weights,              # tied embedding weights (V, H)
        "decoder_b": jnp.zeros((V,), jnp.float32),   # bias init = zeros, as in module
    }
    # One-time prep (pad / transpose / bf16-cast the big decoder weight here,
    # NOT inside the per-step forward).
    params = prepare_lm_head_params(raw_params)

    ref = _reference(hidden_states, params)

    # Fused small-N path.
    out_fused = jax.block_until_ready(
        bert_lm_prediction_head(hidden_states, params, two_pass=False))
    assert out_fused.shape == (B, S, V)
    assert jnp.allclose(out_fused.astype(jnp.float32), ref,
                        atol=5e-3, rtol=5e-3), "fused path mismatch vs reference"

    # Two-pass (training-size) path, exercised at small shapes for correctness.
    out_2p = jax.block_until_ready(
        bert_lm_prediction_head(hidden_states, params, two_pass=True))
    assert out_2p.shape == (B, S, V)
    assert jnp.allclose(out_2p.astype(jnp.float32), ref,
                        atol=5e-3, rtol=5e-3), "two-pass path mismatch vs reference"

    print("KERNEL_OK")
</pallas_src>

<mosaic_0001>
module attributes {stable_mosaic.version = 11 : i64} {
  func.func @_fused_kernel(%arg0: i32, %arg1: i32, %arg2: memref<16x32xbf16, #tpu.memory_space<vmem>>, %arg3: memref<32x32xbf16, #tpu.memory_space<vmem>>, %arg4: memref<1x32xf32, #tpu.memory_space<vmem>>, %arg5: memref<1x32xf32, #tpu.memory_space<vmem>>, %arg6: memref<1x32xf32, #tpu.memory_space<vmem>>, %arg7: memref<32x256xbf16, #tpu.memory_space<vmem>>, %arg8: memref<1x256xf32, #tpu.memory_space<vmem>>, %arg9: memref<16x256xbf16, #tpu.memory_space<vmem>>, %arg10: memref<16x32xbf16, #tpu.memory_space<vmem>>) attributes {dimension_semantics = [#tpu.dimension_semantics<parallel>, #tpu.dimension_semantics<arbitrary>], iteration_bounds = array<i64: 1, 1>, scalar_prefetch = 0 : i64, scratch_operands = 1 : i64, tpu.core_type = #tpu.core_type<tc>, window_params = [{transform_indices = @transform_0, window_bounds = array<i64: 16, 32>}, {pipeline_mode = #tpu.pipeline_mode<synchronous>, transform_indices = @transform_1, window_bounds = array<i64: 32, 32>}, {pipeline_mode = #tpu.pipeline_mode<synchronous>, transform_indices = @transform_2, window_bounds = array<i64: 1, 32>}, {pipeline_mode = #tpu.pipeline_mode<synchronous>, transform_indices = @transform_3, window_bounds = array<i64: 1, 32>}, {pipeline_mode = #tpu.pipeline_mode<synchronous>, transform_indices = @transform_4, window_bounds = array<i64: 1, 32>}, {transform_indices = @transform_5, window_bounds = array<i64: 32, 256>}, {transform_indices = @transform_6, window_bounds = array<i64: 1, 256>}, {transform_indices = @transform_7, window_bounds = array<i64: 16, 256>}]} {
    %c0_i32 = arith.constant 0 : i32
    %0 = arith.cmpi eq, %arg1, %c0_i32 : i32
    %1 = arith.extui %0 : i1 to i32
    %c0_i32_0 = arith.constant 0 : i32
    %2 = arith.cmpi ne, %1, %c0_i32_0 : i32
    scf.if %2 {
      %c0_8 = arith.constant 0 : index
      %c0_9 = arith.constant 0 : index
      %11 = vector.load %arg2[%c0_8, %c0_9] : memref<16x32xbf16, #tpu.memory_space<vmem>>, vector<16x32xbf16>
      %c0_10 = arith.constant 0 : index
      %c0_11 = arith.constant 0 : index
      %12 = vector.load %arg3[%c0_10, %c0_11] : memref<32x32xbf16, #tpu.memory_space<vmem>>, vector<32x32xbf16>
      %cst_12 = arith.constant dense<0.000000e+00> : vector<16x32xf32>
      %13 = tpu.matmul %11, %12, %cst_12 {dimension_numbers = #tpu.dot_dimension_numbers<[1], [0], [0], [1], [0, 0, 1, 1], [], []>} : vector<16x32xbf16>, vector<32x32xbf16>, vector<16x32xf32> -> vector<16x32xf32>
      %c0_13 = arith.constant 0 : index
      %c0_14 = arith.constant 0 : index
      %14 = vector.load %arg4[%c0_13, %c0_14] : memref<1x32xf32, #tpu.memory_space<vmem>>, vector<1x32xf32>
      %15 = vector.broadcast %14 : vector<1x32xf32> to vector<16x32xf32>
      %16 = arith.addf %13, %15 : vector<16x32xf32>
      %cst_15 = arith.constant 5.000000e-01 : f32
      %17 = vector.broadcast %cst_15 : f32 to vector<16x32xf32>
      %18 = arith.mulf %16, %17 : vector<16x32xf32>
      %cst_16 = arith.constant 0.707106769 : f32
      %19 = vector.broadcast %cst_16 : f32 to vector<16x32xf32>
      %20 = arith.mulf %16, %19 : vector<16x32xf32>
      %21 = math.erf %20 : vector<16x32xf32>
      %cst_17 = arith.constant 1.000000e+00 : f32
      %22 = vector.broadcast %cst_17 : f32 to vector<16x32xf32>
      %23 = arith.addf %22, %21 : vector<16x32xf32>
      %24 = arith.mulf %18, %23 : vector<16x32xf32>
      %cst_18 = arith.constant dense<0.000000e+00> : vector<16xf32>
      %25 = vector.multi_reduction <add>, %24, %cst_18 [1] : vector<16x32xf32> to vector<16xf32>
      %26 = vector.shape_cast %25 : vector<16xf32> to vector<16x1xf32>
      %cst_19 = arith.constant 3.200000e+01 : f32
      %27 = vector.broadcast %cst_19 : f32 to vector<16x1xf32>
      %28 = arith.divf %26, %27 : vector<16x1xf32>
      %29 = vector.broadcast %28 : vector<16x1xf32> to vector<16x32xf32>
      %30 = arith.subf %24, %29 : vector<16x32xf32>
      %31 = arith.mulf %30, %30 : vector<16x32xf32>
      %cst_20 = arith.constant dense<0.000000e+00> : vector<16xf32>
      %32 = vector.multi_reduction <add>, %31, %cst_20 [1] : vector<16x32xf32> to vector<16xf32>
      %33 = vector.shape_cast %32 : vector<16xf32> to vector<16x1xf32>
      %cst_21 = arith.constant 3.200000e+01 : f32
      %34 = vector.broadcast %cst_21 : f32 to vector<16x1xf32>
      %35 = arith.divf %33, %34 : vector<16x1xf32>
      %36 = vector.broadcast %28 : vector<16x1xf32> to vector<16x32xf32>
      %37 = arith.subf %24, %36 : vector<16x32xf32>
      %cst_22 = arith.constant 9.99999996E-13 : f32
      %38 = vector.broadcast %cst_22 : f32 to vector<16x1xf32>
      %39 = arith.addf %35, %38 : vector<16x1xf32>
      %40 = math.rsqrt %39 : vector<16x1xf32>
      %41 = vector.broadcast %40 : vector<16x1xf32> to vector<16x32xf32>
      %42 = arith.mulf %37, %41 : vector<16x32xf32>
      %c0_23 = arith.constant 0 : index
      %c0_24 = arith.constant 0 : index
      %43 = vector.load %arg5[%c0_23, %c0_24] : memref<1x32xf32, #tpu.memory_space<vmem>>, vector<1x32xf32>
      %44 = vector.broadcast %43 : vector<1x32xf32> to vector<16x32xf32>
      %45 = arith.mulf %44, %42 : vector<16x32xf32>
      %c0_25 = arith.constant 0 : index
      %c0_26 = arith.constant 0 : index
      %46 = vector.load %arg6[%c0_25, %c0_26] : memref<1x32xf32, #tpu.memory_space<vmem>>, vector<1x32xf32>
      %47 = vector.broadcast %46 : vector<1x32xf32> to vector<16x32xf32>
      %48 = arith.addf %45, %47 : vector<16x32xf32>
      %49 = arith.truncf %48 : vector<16x32xf32> to vector<16x32xbf16>
      %c0_27 = arith.constant 0 : index
      %c0_28 = arith.constant 0 : index
      %50 = vector.load %arg10[%c0_27, %c0_28] : memref<16x32xbf16, #tpu.memory_space<vmem>>, vector<16x32xbf16>
      tpu.vector_store %arg10[%c0_27, %c0_28], %49 {strides = array<i32>} : memref<16x32xbf16, #tpu.memory_space<vmem>>, vector<16x32xbf16>,
    } else {
    }
    %c0 = arith.constant 0 : index
    %c0_1 = arith.constant 0 : index
    %3 = vector.load %arg10[%c0, %c0_1] : memref<16x32xbf16, #tpu.memory_space<vmem>>, vector<16x32xbf16>
    %c0_2 = arith.constant 0 : index
    %c0_3 = arith.constant 0 : index
    %4 = vector.load %arg7[%c0_2, %c0_3] : memref<32x256xbf16, #tpu.memory_space<vmem>>, vector<32x256xbf16>
    %cst = arith.constant dense<0.000000e+00> : vector<16x256xf32>
    %5 = tpu.matmul %3, %4, %cst {dimension_numbers = #tpu.dot_dimension_numbers<[1], [0], [0], [1], [0, 0, 1, 1], [], []>} : vector<16x32xbf16>, vector<32x256xbf16>, vector<16x256xf32> -> vector<16x256xf32>
    %c0_4 = arith.constant 0 : index
    %c0_5 = arith.constant 0 : index
    %6 = vector.load %arg8[%c0_4, %c0_5] : memref<1x256xf32, #tpu.memory_space<vmem>>, vector<1x256xf32>
    %7 = vector.broadcast %6 : vector<1x256xf32> to vector<16x256xf32>
    %8 = arith.addf %5, %7 : vector<16x256xf32>
    %9 = arith.truncf %8 : vector<16x256xf32> to vector<16x256xbf16>
    %c0_6 = arith.constant 0 : index
    %c0_7 = arith.constant 0 : index
    %10 = vector.load %arg9[%c0_6, %c0_7] : memref<16x256xbf16, #tpu.memory_space<vmem>>, vector<16x256xbf16>
    tpu.vector_store %arg9[%c0_6, %c0_7], %9 {strides = array<i32>} : memref<16x256xbf16, #tpu.memory_space<vmem>>, vector<16x256xbf16>,
    return
  }
  func.func @transform_0(%arg0: i32, %arg1: i32) -> (i32, i32) {
    %c0_i32 = arith.constant 0 : i32
    %c0_i32_0 = arith.constant 0 : i32
    return %arg0, %c0_i32 : i32, i32
  }
  func.func @transform_1(%arg0: i32, %arg1: i32) -> (i32, i32) {
    %c0_i32 = arith.constant 0 : i32
    %c0_i32_0 = arith.constant 0 : i32
    %c0_i32_1 = arith.constant 0 : i32
    return %c0_i32, %c0_i32_0 : i32, i32
  }
  func.func @transform_2(%arg0: i32, %arg1: i32) -> (i32, i32) {
    %c0_i32 = arith.constant 0 : i32
    %c0_i32_0 = arith.constant 0 : i32
    %c0_i32_1 = arith.constant 0 : i32
    return %c0_i32, %c0_i32_0 : i32, i32
  }
  func.func @transform_3(%arg0: i32, %arg1: i32) -> (i32, i32) {
    %c0_i32 = arith.constant 0 : i32
    %c0_i32_0 = arith.constant 0 : i32
    %c0_i32_1 = arith.constant 0 : i32
    return %c0_i32, %c0_i32_0 : i32, i32
  }
  func.func @transform_4(%arg0: i32, %arg1: i32) -> (i32, i32) {
    %c0_i32 = arith.constant 0 : i32
    %c0_i32_0 = arith.constant 0 : i32
    %c0_i32_1 = arith.constant 0 : i32
    return %c0_i32, %c0_i32_0 : i32, i32
  }
  func.func @transform_5(%arg0: i32, %arg1: i32) -> (i32, i32) {
    %c0_i32 = arith.constant 0 : i32
    %c0_i32_0 = arith.constant 0 : i32
    return %c0_i32, %arg1 : i32, i32
  }
  func.func @transform_6(%arg0: i32, %arg1: i32) -> (i32, i32) {
    %c0_i32 = arith.constant 0 : i32
    %c0_i32_0 = arith.constant 0 : i32
    return %c0_i32, %arg1 : i32, i32
  }
  func.func @transform_7(%arg0: i32, %arg1: i32) -> (i32, i32) {
    %c0_i32 = arith.constant 0 : i32
    return %arg0, %arg1 : i32, i32
  }
}

</mosaic_0001>

<bundles_post_ra>
// kernel: tpu_custom_call.1
= control target key start
LH: loop header
LB: loop body
LE: loop exit
PB: predicated region body
PF: predicated region fallthrough
CT: control target
= control target key end

     0   :  { %12 = vsyncpa [#allocation4], 0  ;;  %s601_s0 = inlined_call_operand.hbm [shape: bf16[16,32], index: 0, kind: input, shape index: {}]   ;;  %s602_s1 = inlined_call_operand.hbm [shape: bf16[32,32], index: 1, kind: input, shape index: {}]   ;;  %s603_s2 = inlined_call_operand.vmem [shape: f32[1,32], index: 2, kind: input, shape index: {}]   ;;  %s604_s3 = inlined_call_operand.vmem [shape: f32[1,32], index: 3, kind: input, shape index: {}]   ;;  %s605_s4 = inlined_call_operand.vmem [shape: f32[1,32], index: 4, kind: input, shape index: {}]   ;;  %s606_s5 = inlined_call_operand.hbm [shape: bf16[32,256], index: 5, kind: input, shape index: {}]   ;;  %s607_s6 = inlined_call_operand.vmem [shape: f32[1,256], index: 6, kind: input, shape index: {}]   ;;  %s608_s7 = inlined_call_operand.hbm [shape: bf16[16,256], index: 7, kind: output, shape index: {}]  }
   0x1   :  { %13 = vsyncpa [#allocation7], 0 }
   0x2   :  { %14 = vsyncpa [#allocation5], 0  ;;  %s470_s24 = smov [#allocation6]   ;;  %s471_s26 = smov [#allocation3]  }
   0x3   :  { %s32_s25 = sshll.u32 %s470_s24, 4  ;;  %s20_s27 = sshll.u32 %s471_s26, 4  ;;  %s33_s25 = int_to_ptr.vmem [resolvable:$true] %s32_s25  ;;  %s521_s27 = int_to_ptr.vmem [resolvable:$true] %s20_s27 }
   0x4   :  { %s376_s30 = scalar_lea.hbm %s602_s1, 256 }
   0x5   :  { %p377_p0 = scmp.ne.s32.totalorder %s602_s1, %s376_s30  ;;  %p380_p1 = scmp.lt.u32.totalorder %s376_s30, %s602_s1 }
   0x7   :  { %p382_p2 = pnand %p380_p1, %p377_p0 }
   0x9   :  { %385 = shalt.err (!%p382_p2)
}
   0xa   :  { %s386_s12 = scalar_lea.vmem %s33_s25, 256  ;;  %p391_p4 = scmp.lt.s32.totalorder %s33_s25, %s33_s25 }
   0xb   :  { %p387_p3 = scmp.ne.s32.totalorder %s33_s25, %s386_s12  ;;  %p392_p5 = scmp.lt.s32.totalorder %s386_s12, %s386_s12 }
   0xd   :  { %p393_p6 = por %p392_p5, %p391_p4 }
   0xf   :  { %p394_p7 = pnand %p393_p6, %p387_p3 }
  0x11   :  { %397 = shalt.err (!%p394_p7)
}
  0x12   :  { %s472_s13 = smov 64   ;;  %s473_s14 = smov 4  }
  0x13   :  { %38 = dma.hbm_to_vmem [thread:$0]  %s602_s1, 256, %s33_s25, [#allocation7], %s472_s13, %s472_s13, %s473_s14  }
  0x14   :  { %s398_s19 = scalar_lea.hbm %s601_s0, 128 }
  0x15   :  { %p399_p8 = scmp.ne.s32.totalorder %s601_s0, %s398_s19  ;;  %p402_p9 = scmp.lt.u32.totalorder %s398_s19, %s601_s0 }
  0x17   :  { %p404_p10 = pnand %p402_p9, %p399_p8 }
  0x19   :  { %407 = shalt.err (!%p404_p10)
}
  0x1a   :  { %s408_s24 = scalar_lea.vmem %s521_s27, 128  ;;  %p413_p12 = scmp.lt.s32.totalorder %s521_s27, %s521_s27 }
  0x1b   :  { %p409_p11 = scmp.ne.s32.totalorder %s521_s27, %s408_s24  ;;  %p414_p13 = scmp.lt.s32.totalorder %s408_s24, %s408_s24 }
  0x1d   :  { %p415_p0 = por %p414_p13, %p413_p12 }
  0x1f   :  { %p416_p1 = pnand %p415_p0, %p409_p11 }
  0x21   :  { %419 = shalt.err (!%p416_p1)
}
  0x22   :  { %26 = dma.hbm_to_vmem [thread:$0]  %s601_s0, 128, %s521_s27, [#allocation4], %s472_s13, %s472_s13, %s473_s14  }
  0x23   :  { %s474_s26 = smov [#allocation8]   ;;  %s420_s8 = scalar_lea.hbm %s606_s5, 512 }
  0x24   :  { %s50_s28 = sshll.u32 %s474_s26, 4  ;;  %p421_p2 = scmp.ne.s32.totalorder %s606_s5, %s420_s8  ;;  %s51_s28 = int_to_ptr.vmem [resolvable:$true] %s50_s28 }
  0x25   :  { %p424_p3 = scmp.lt.u32.totalorder %s420_s8, %s606_s5 }
  0x27   :  { %p426_p4 = pnand %p424_p3, %p421_p2 }
  0x29   :  { %429 = shalt.err (!%p426_p4)
}
  0x2a   :  { %s430_s15 = scalar_lea.vmem %s51_s28, 512  ;;  %p435_p6 = scmp.lt.s32.totalorder %s51_s28, %s51_s28 }
  0x2b   :  { %p431_p5 = scmp.ne.s32.totalorder %s51_s28, %s430_s15  ;;  %p436_p7 = scmp.lt.s32.totalorder %s430_s15, %s430_s15 }
  0x2d   :  { %p437_p8 = por %p436_p7, %p435_p6 }
  0x2f   :  { %p438_p9 = pnand %p437_p8, %p431_p5 }
  0x31   :  { %441 = shalt.err (!%p438_p9)
}
  0x32   :  { %s475_s0 = smov 128   ;;  %s476_s27 = smov 8  }
  0x33   :  { %56 = dma.hbm_to_vmem [thread:$0]  %s606_s5, 512, %s51_s28, [#allocation7], %s475_s0, %s475_s0, %s476_s27  }
  0x34   :  { %464 = dma.done.wait [#allocation4], 128  }
  0x35   :  { %465 = vsyncadd [#allocation4], 4294967168 }
  0x36   :  { %466 = dma.done.wait [#allocation7], 768  }
  0x37   :  { %467 = vsyncadd [#allocation7], 4294966528  ;;  %v477_v0 = vmov 0.0   ;;  %vm478_vm0 = vmmov 0   ;;  %v359_v1 = vld [vmem:[#allocation6] sm:$0xff]   ;;  %v360_v2 = vld [vmem:[#allocation6 + $0x8] sm:$0xff]   ;;  %v212_v56 = vlaneseq }
  0x38   :  { %340 = vmatprep.subr.bf16.mxu0 %v477_v0  ;;  %344 = vmatprep.mubr.msk.bf16.mxu0 %vm478_vm0, %v477_v0  ;;  %v361_v3 = vld [vmem:[#allocation3] sm:$0xff]   ;;  %vm103_vm1 = vcmask 261120   ;;  %v321_v4 = vld [vmem:[%s603_s2] ss:$0 sm:$0xff]  ;;  %v365_v35 = vld [vmem:[#allocation8 + $0x14] ss:$8 sps:$4 sm:$0xff]  }
  0x39   :  { %341 = vmatpush3.bf16.msra.mxu0 %v359_v1  ;;  %v362_v33 = vld [vmem:[#allocation8 + $0x4] ss:$8 sps:$4 sm:$0xff]   ;;  %v364_v34 = vld [vmem:[#allocation8] ss:$8 sps:$4 sm:$0xff]   ;;  %v367_v36 = vld [vmem:[#allocation8 + $0x10] ss:$8 sps:$4 sm:$0xff]  }
  0x3a   :  { %342 = vmatprep.subr.bf16.mxu0 %v477_v0  ;;  %246 = vmatprep.subr.bf16.mxu1 %v362_v33  ;;  %v479_v37 = vmov 0   ;;  %v326_v46 = vld [vmem:[%s604_s3] ss:$0 sm:$0xff]  ;;  %v213_v57 = vshrl.u32 %v212_v56, 7 }
  0x3b   :  { %247 = vmatpush1.bf16.msra.mxu1 %v364_v34  ;;  %278 = vmatprep.mubr.bf16.mxu1 %v479_v37  ;;  %v327_v50 = vld [vmem:[%s605_s4] ss:$0 sm:$0xff]  ;;  %s480_s4 = smov [#allocation9]  }
  0x3c   :  { %248 = vmatprep.subr.bf16.mxu1 %v365_v35  ;;  %v214_v58 = vsub.s32 0, %v213_v57  ;;  %v210_v59 = vld [vmem:[%s607_s6] sm:$0x3]  ;;  %v218_v60 = vsub.s32 1, %v213_v57  ;;  %s308_s21 = sshll.u32 %s480_s4, 4  ;;  %s309_s21 = int_to_ptr.vmem [resolvable:$true] %s308_s21 }
  0x3d   :  { %343 = vmatpush3.bf16.msra.mxu0 %v360_v2  ;;  %s442_s22 = scalar_lea.vmem %s309_s21, 256  ;;  %p447_p11 = scmp.lt.s32.totalorder %s309_s21, %s309_s21 }
  0x3e   :  { %v215_v61 = vrot.slane %v210_v59, %v214_v58  ;;  %v219_v62 = vrot.slane %v210_v59, %v218_v60  ;;  %p443_p10 = scmp.ne.s32.totalorder %s309_s21, %s442_s22  ;;  %p448_p12 = scmp.lt.s32.totalorder %s442_s22, %s442_s22 }
  0x3f   :  { %249 = vmatpush1.bf16.msra.mxu1 %v367_v36 }
  0x40   :  { %345 = vmatmul.mubr.msk.bf16.vlgmr.msra.gmra.mrb[0].mxu0 %vm103_vm1, %v361_v3  ;;  %p449_p13 = por %p448_p12, %p447_p11 }
  0x42   :  { %p450_p0 = pnand %p449_p13, %p443_p10 }
 0x113   :  { %v141_v5 = vpop.f32.mrb[0].mxu0 }
 0x114   :  { %v142_v6 = vadd.f32 %v321_v4, %v141_v5  ;;  %v346_v7 = vpop.f32.mrb[1].mxu0 }
 0x115   :  { %v144_v8 = vpop.f32.mrb[2].mxu0 }
 0x116   :  { %v150_v9 = vmul.f32 0.70710677, %v142_v6  ;;  %v145_v10 = vadd.f32 %v321_v4, %v144_v8  ;;  %v347_v11 = vpop.f32.mrb[3].mxu0  ;;  %v148_v14 = vmul.f32 0.5, %v142_v6 }
 0x118   :  { %368 = verf.f32 %v150_v9  ;;  %v151_v12 = vmul.f32 0.70710677, %v145_v10  ;;  %v149_v17 = vmul.f32 0.5, %v145_v10 }
 0x11a   :  { %370 = verf.f32 %v151_v12 }
 0x122   :  { %v369_v13 = vpop.eup %368 }
 0x123   :  { %v154_v15 = vadd.f32 1.0, %v369_v13 }
 0x124   :  { %v371_v16 = vpop.eup %370 }
 0x125   :  { %v156_v18 = vmul.f32 %v154_v15, %v148_v14  ;;  %v155_v19 = vadd.f32 1.0, %v371_v16 }
 0x127   :  { %v158_v20 = vsel %vm103_vm1, %v156_v18, 0.0  ;;  %v157_v21 = vmul.f32 %v155_v19, %v149_v17 }
 0x128   :  { %159 = vadd.xlane.f32.xlu0 %v158_v20 }
 0x129   :  { %v161_v22 = vsel %vm103_vm1, %v157_v21, 0.0 }
 0x12c   :  { %162 = vadd.xlane.f32.xlu0 %v161_v22 }
 0x1b5   :  { %v160_v23 = vpop.xlane.xlu0 %159 }
 0x1b6   :  { %v165_v24 = vmul.f32 0.03125, %v160_v23 }
 0x1b8   :  { %v167_v25 = vsub.f32 %v156_v18, %v165_v24 }
 0x1b9   :  { %v163_v26 = vpop.xlane.xlu0 %162 }
 0x1ba   :  { %v166_v27 = vmul.f32 0.03125, %v163_v26  ;;  %v169_v28 = vmul.f32 %v167_v25, %v167_v25 }
 0x1bc   :  { %v168_v29 = vsub.f32 %v157_v21, %v166_v27  ;;  %v171_v30 = vsel %vm103_vm1, %v169_v28, 0.0 }
 0x1bd   :  { %172 = vadd.xlane.f32.xlu1 %v171_v30 }
 0x1be   :  { %v170_v31 = vmul.f32 %v168_v29, %v168_v29 }
 0x1c0   :  { %v174_v32 = vsel %vm103_vm1, %v170_v31, 0.0 }
 0x1c1   :  { %175 = vadd.xlane.f32.xlu1 %v174_v32 }
 0x24a   :  { %v173_v38 = vpop.xlane.xlu1 %172 }
 0x24b   :  { %v177_v39 = vmul.f32 0.03125, %v173_v38 }
 0x24d   :  { %v179_v40 = vadd.f32 1e-12, %v177_v39 }
 0x24e   :  { %v176_v41 = vpop.xlane.xlu1 %175 }
 0x24f   :  { %372 = vrsqrt.f32 %v179_v40  ;;  %v178_v42 = vmul.f32 0.03125, %v176_v41 }
 0x251   :  { %v180_v43 = vadd.f32 1e-12, %v178_v42 }
 0x253   :  { %374 = vrsqrt.f32 %v180_v43 }
 0x259   :  { %v373_v44 = vpop.eup %372 }
 0x25a   :  { %v183_v45 = vmul.f32 %v373_v44, %v167_v25 }
 0x25c   :  { %v192_v48 = vmul.f32 %v326_v46, %v183_v45 }
 0x25d   :  { %v375_v47 = vpop.eup %374 }
 0x25e   :  { %v184_v49 = vmul.f32 %v375_v47, %v168_v29  ;;  %v201_v52 = vadd.f32 %v327_v50, %v192_v48 }
 0x260   :  { %v193_v51 = vmul.f32 %v326_v46, %v184_v49 }
 0x262   :  { %v202_v53 = vadd.f32 %v327_v50, %v193_v51 }
 0x264   :  { %v203_v54 = vpack.c.bf16 %v202_v53, %v201_v52 }
 0x266   :  { %204 = vst.msk [vmem:[#allocation2] sm:$0xff] %vm103_vm1, %v203_v54 }
 0x26d   :  { %v205_v55 = vld [vmem:[#allocation2] sm:$0xff] }
 0x26e   :  { %332 = vmatmul.mubr.msk.bf16.vlgmr.msra.gmra.mrb[0].mxu1 %vm103_vm1, %v205_v55 }
 0x341   :  { %v280_v63 = vpop.f32.mrb[0].mxu1 }
 0x342   :  { %v281_v0 = vadd.f32 %v280_v63, %v215_v61  ;;  %v282_v1 = vpop.f32.mrb[1].mxu1 }
 0x343   :  { %v283_v2 = vadd.f32 %v282_v1, %v219_v62  ;;  %v284_v3 = vpop.f32.mrb[2].mxu1 }
 0x344   :  { %v285_v4 = vadd.f32 %v284_v3, %v215_v61  ;;  %v286_v5 = vpop.f32.mrb[3].mxu1 }
 0x345   :  { %v335_v6 = vpack.c.bf16 %v283_v2, %v281_v0  ;;  %v287_v7 = vadd.f32 %v286_v5, %v219_v62 }
 0x347   :  { %301 = vst [vmem:[#allocation9] sm:$0xff] %v335_v6  ;;  %v336_v8 = vpack.c.bf16 %v287_v7, %v285_v4 }
 0x349   :  { %302 = vst [vmem:[#allocation9 + $0x8] sm:$0xff] %v336_v8 }
 0x34a   :  { %453 = shalt.err (!%p450_p0)
}
 0x34b   :  { %s454_s24 = scalar_lea.hbm %s608_s7, 256 }
 0x34c   :  { %p455_p1 = scmp.ne.s32.totalorder %s608_s7, %s454_s24  ;;  %p458_p2 = scmp.lt.u32.totalorder %s454_s24, %s608_s7 }
 0x34e   :  { %p460_p3 = pnand %p458_p2, %p455_p1 }
 0x350   :  { %463 = shalt.err (!%p460_p3)
}
 0x351   :  { %314 = dma.vmem_to_hbm [thread:$0]  %s309_s21, 256, %s608_s7, [#allocation5], %s475_s0, %s475_s0, %s476_s27  }
 0x352   :  { %468 = dma.done.wait [#allocation5], 256  }
 0x353   :  { %469 = vsyncadd [#allocation5], 4294967040 }
 0x354   :  { %318 = vsyncpa [#allocation4], 1 }
 0x355   :  { %319 = vsyncpa [#allocation7], 1 }
 0x356   :  { %320 = vsyncpa [#allocation5], 1 }

</bundles_post_ra>
